<compile_context>
chip_gen: v5e
topology: v5e:2x2
jax: 0.10.0
libtpu: 0.0.40
codegen_flags: <defaults>
</compile_context>

<pallas_src>
import functools

import jax
import jax.numpy as jnp
from jax.experimental import pallas as pl
from jax.experimental.pallas import tpu as pltpu


# --------------------------------------------------------------------------
# Kernels
# --------------------------------------------------------------------------

def _gate_split(f, const, wcf, compute_dtype):
    """Spatial gate s = sigmoid(relu(conv2_cat+BN)), g = f*s, lo = f - g.

    f     : (Bt, C, HWx) compute dtype
    const : (Bt, 1, 1)   f32 (w-vector half of conv2_cat + folded BN bias)
    wcf   : (C, 1)       compute dtype (folded conv2_cat weight, feature half)
    Channel reduce accumulates in f32.
    """
    logit = jnp.sum((f * wcf[None, :, :]).astype(jnp.float32),
                    axis=1, keepdims=True)                 # (Bt, 1, HWx) f32
    logit = logit + const
    s = jax.nn.sigmoid(jnp.maximum(logit, 0.0)).astype(compute_dtype)
    g = f * s
    return g, f - g


def _single_pass_kernel(feat_ref, const_ref, wcf_ref, w1h_ref, w1l_ref, b1_ref,
                        w2h_ref, w2l_ref, b2h_ref, b2l_ref, out_ref,
                        *, compute_dtype, inv_hw):
    cdt = compute_dtype
    f = feat_ref[...].astype(cdt)                          # (Bt, C, HWp)
    C = f.shape[1]
    g, lo = _gate_split(f, const_ref[...], wcf_ref[...], cdt)

    # Global average pool over HW (f32 accumulation). Padded lanes are zero in
    # both f and g, so sums are exact; divide by the real H*W.
    pooled_hi = jnp.sum(g.astype(jnp.float32), axis=2) * inv_hw    # (Bt, C)
    pooled_lo = jnp.sum(lo.astype(jnp.float32), axis=2) * inv_hw

    # Squeeze/excite MLP (tiny, f32; weights pre-split in the wrapper).
    mid = jnp.maximum(
        jnp.dot(pooled_hi, w1h_ref[...], preferred_element_type=jnp.float32)
        + jnp.dot(pooled_lo, w1l_ref[...], preferred_element_type=jnp.float32)
        + b1_ref[...], 0.0)                                # (Bt, Cr)
    cw_hi = jax.nn.sigmoid(
        jnp.dot(mid, w2h_ref[...], preferred_element_type=jnp.float32)
        + b2h_ref[...]) + 1.0                              # hl*cw + hl == hl*(cw+1)
    cw_lo = jax.nn.sigmoid(
        jnp.dot(mid, w2l_ref[...], preferred_element_type=jnp.float32)
        + b2l_ref[...]) + 1.0

    out_ref[:, :C, :] = (g * cw_hi.astype(cdt)[:, :, None]).astype(out_ref.dtype)
    out_ref[:, C:, :] = (lo * cw_lo.astype(cdt)[:, :, None]).astype(out_ref.dtype)


def _pool_kernel(feat_ref, const_ref, wcf_ref, hi_ref, lo_ref, *, compute_dtype):
    """Two-pass path, pass 1: accumulate sum_HW(f*s) and sum_HW(f-g) per batch.
    Grid = (batch, hw-chunk); hw axis is an 'arbitrary' reduction axis and the
    (Bt, C, 1) outputs stay resident across it."""
    h = pl.program_id(1)

    @pl.when(h == 0)
    def _():
        hi_ref[...] = jnp.zeros_like(hi_ref)
        lo_ref[...] = jnp.zeros_like(lo_ref)

    f = feat_ref[...].astype(compute_dtype)                # (Bt, C, HWt)
    g, lo = _gate_split(f, const_ref[...], wcf_ref[...], compute_dtype)
    hi_ref[...] += jnp.sum(g.astype(jnp.float32), axis=2, keepdims=True)
    lo_ref[...] += jnp.sum(lo.astype(jnp.float32), axis=2, keepdims=True)


def _apply_kernel(feat_ref, const_ref, wcf_ref, cwh_ref, cwl_ref, out_ref,
                  *, compute_dtype):
    """Two-pass path, pass 2: recompute the gate per hw chunk and apply the
    channel weights (cw+1)."""
    cdt = compute_dtype
    f = feat_ref[...].astype(cdt)                          # (Bt, C, HWt)
    C = f.shape[1]
    g, lo = _gate_split(f, const_ref[...], wcf_ref[...], cdt)
    out_ref[:, :C, :] = (g * cwh_ref[...]).astype(out_ref.dtype)
    out_ref[:, C:, :] = (lo * cwl_ref[...]).astype(out_ref.dtype)


# --------------------------------------------------------------------------
# Wrapper / tiling heuristics
# --------------------------------------------------------------------------

def _tpu_memory_info():
    """(physical VMEM bytes, chip lacks bf16 VALU)."""
    vmem_cap = None
    try:
        vmem_cap = int(pltpu.get_tpu_info().vmem_capacity_bytes)
    except Exception:
        vmem_cap = None
    kind = ""
    try:
        kind = str(getattr(jax.devices()[0], "device_kind", "")).lower()
    except Exception:
        kind = ""
    if vmem_cap is None:
        vmem_cap = (64 << 20) if "v7" in kind else (128 << 20)
    no_bf16_valu = any(t in kind for t in ("v2", "v3", "v4", "v5"))
    return vmem_cap, no_bf16_valu


def _choose_block_batch(B, per_batch_io, per_batch_work, target_bytes, budget_bytes):
    """Largest divisor of B whose per-step footprint fits the VMEM budget,
    preferring io tiles <= target and an even step count (so the 1-D
    'parallel' grid balances across two TensorCores). None => fall back to
    the HW-blocked two-pass path."""
    feasible = []
    for d in range(1, B + 1):
        if B % d:
            continue
        steps = B // d
        if B >= 2 and steps < 2:
            continue
        footprint = 2 * d * per_batch_io + d * per_batch_work + (1 << 20)
        if footprint > budget_bytes:
            continue
        feasible.append(d)
    if not feasible:
        return None
    under = [d for d in feasible if d * per_batch_io <= target_bytes]
    pool = under if under else [min(feasible)]
    return max(pool, key=lambda d: ((B // d) % 2 == 0, d))


def _choose_hw_chunk(HW_pad, per_lane_io, per_lane_work, target_bytes, budget_bytes):
    """Largest multiple-of-128 divisor of HW_pad fitting the VMEM budget,
    preferring >= 2 chunks (TensorCore parallelism in the apply pass)."""
    m = HW_pad // 128
    feasible = []
    for d in range(1, m + 1):
        if m % d:
            continue
        hwt = 128 * d
        footprint = 2 * hwt * per_lane_io + hwt * per_lane_work + (1 << 20)
        if footprint > budget_bytes:
            continue
        feasible.append(hwt)
    if not feasible:
        return 128
    under = [hwt for hwt in feasible
             if hwt * per_lane_io <= target_bytes and (m == 1 or HW_pad // hwt >= 2)]
    pool = under if under else [min(feasible)]
    return max(pool)


def channel_attn_dy(features_nchw, w_bc11, params):
    """Pallas implementation of ChannelAttn_DY.forward (BN in inference mode)."""
    B, C, H, W = features_nchw.shape
    HW = H * W
    HW_pad = ((HW + 127) // 128) * 128            # lane-dense stores
    C2 = 2 * C
    Cr = params["conv1_w"].shape[0]               # C // reduction_rate
    out_dtype = features_nchw.dtype

    vmem_cap, no_bf16_valu = _tpu_memory_info()
    cdt = (jnp.bfloat16 if (out_dtype == jnp.bfloat16 and not no_bf16_valu)
           else jnp.float32)

    # ---- glue: NCHW-native flatten + optional lane pad + BN fold (tiny JAX) --
    feat = features_nchw.reshape(B, C, HW)
    if HW_pad != HW:
        feat = jnp.pad(feat, ((0, 0), (0, 0), (0, HW_pad - HW)))

    bn_scale = params["bn_gamma"] / jnp.sqrt(params["bn_var"] + params["bn_eps"])
    bn_shift = params["bn_beta"] - params["bn_mean"] * bn_scale
    wcat = (params["cat_w"] * bn_scale).astype(jnp.float32)              # (2C,)
    catb = (params["cat_b"] * bn_scale + bn_shift).astype(jnp.float32)   # scalar

    # Per-batch constant from the (B,C,1,1) "w" vector half of conv2_cat.
    wv = w_bc11.reshape(B, C).astype(jnp.float32)
    const = (wv @ wcat[C:] + catb).reshape(B, 1, 1)                      # (B,1,1) f32

    wcf = wcat[:C].reshape(C, 1).astype(cdt)                             # (C, 1)
    w1 = params["conv1_w"].astype(jnp.float32)                           # (Cr, 2C)
    w1h, w1l = w1[:, :C].T, w1[:, C:].T                                  # (C, Cr) each
    b1 = params["conv1_b"].reshape(1, Cr).astype(jnp.float32)
    w2 = params["conv2_w"].astype(jnp.float32)                           # (2C, Cr)
    w2h, w2l = w2[:C, :].T, w2[C:, :].T                                  # (Cr, C) each
    b2h = params["conv2_b"][:C].reshape(1, C).astype(jnp.float32)
    b2l = params["conv2_b"][C:].reshape(1, C).astype(jnp.float32)

    io_item = jnp.dtype(out_dtype).itemsize
    cdt_item = jnp.dtype(cdt).itemsize
    budget = int(vmem_cap * 0.45)                         # tile-selection budget
    target = int(max(4 << 20, min(16 << 20, vmem_cap // 10)))  # ~12MiB v5e/v6e, ~6MiB v7x
    per_batch_io = 3 * C * HW_pad * io_item               # read C + write 2C
    per_batch_work = C * HW_pad * (4 * cdt_item + 12)     # conservative f32/cdt working set
    inv_hw = 1.0 / float(HW)

    def _limit(est):
        return int(min(max(est + (8 << 20), 16 << 20), vmem_cap * 4 // 5))

    Bt = (_choose_block_batch(B, per_batch_io, per_batch_work, target, budget)
          if B >= 2 else None)

    if Bt is not None:
        # ---------------- single-pass: whole spatial slab per grid step -------
        est = 2 * Bt * per_batch_io + Bt * per_batch_work + (2 << 20)
        out = pl.pallas_call(
            functools.partial(_single_pass_kernel, compute_dtype=cdt, inv_hw=inv_hw),
            out_shape=jax.ShapeDtypeStruct((B, C2, HW_pad), out_dtype),
            grid=(B // Bt,),
            in_specs=[
                pl.BlockSpec((Bt, C, HW_pad), lambda b: (b, 0, 0)),   # features
                pl.BlockSpec((Bt, 1, 1), lambda b: (b, 0, 0)),        # per-batch const
                pl.BlockSpec((C, 1), lambda b: (0, 0)),               # folded cat_w (feat half)
                pl.BlockSpec((C, Cr), lambda b: (0, 0)),              # conv1 W (hi half)^T
                pl.BlockSpec((C, Cr), lambda b: (0, 0)),              # conv1 W (lo half)^T
                pl.BlockSpec((1, Cr), lambda b: (0, 0)),              # conv1 bias
                pl.BlockSpec((Cr, C), lambda b: (0, 0)),              # conv2 W (hi half)^T
                pl.BlockSpec((Cr, C), lambda b: (0, 0)),              # conv2 W (lo half)^T
                pl.BlockSpec((1, C), lambda b: (0, 0)),               # conv2 bias (hi)
                pl.BlockSpec((1, C), lambda b: (0, 0)),               # conv2 bias (lo)
            ],
            out_specs=pl.BlockSpec((Bt, C2, HW_pad), lambda b: (b, 0, 0)),
            compiler_params=pltpu.CompilerParams(
                dimension_semantics=("parallel",),
                vmem_limit_bytes=_limit(est)),
        )(feat, const, wcf, w1h, w1l, b1, w2h, w2l, b2h, b2l)
    else:
        # ---------------- two-pass, HW-blocked (B == 1 or oversized slabs) ----
        per_lane_io = 3 * C * io_item
        per_lane_work = C * (4 * cdt_item + 12)
        HWt = _choose_hw_chunk(HW_pad, per_lane_io, per_lane_work, target, budget)
        n_hw = HW_pad // HWt
        est = 2 * HWt * per_lane_io + HWt * per_lane_work + (2 << 20)
        vmem_limit = _limit(est)

        # Pass 1: pooled sums per batch (hw axis = resident-accumulator reduce).
        hi_sum, lo_sum = pl.pallas_call(
            functools.partial(_pool_kernel, compute_dtype=cdt),
            out_shape=(jax.ShapeDtypeStruct((B, C, 1), jnp.float32),
                       jax.ShapeDtypeStruct((B, C, 1), jnp.float32)),
            grid=(B, n_hw),
            in_specs=[
                pl.BlockSpec((1, C, HWt), lambda b, h: (b, 0, h)),
                pl.BlockSpec((1, 1, 1), lambda b, h: (b, 0, 0)),
                pl.BlockSpec((C, 1), lambda b, h: (0, 0)),
            ],
            out_specs=(pl.BlockSpec((1, C, 1), lambda b, h: (b, 0, 0)),
                       pl.BlockSpec((1, C, 1), lambda b, h: (b, 0, 0))),
            compiler_params=pltpu.CompilerParams(
                dimension_semantics=("parallel", "arbitrary"),
                vmem_limit_bytes=vmem_limit),
        )(feat, const, wcf)

        # Squeeze/excite MLP is tiny -> plain JAX between the two passes.
        pooled_hi = hi_sum[:, :, 0] * inv_hw
        pooled_lo = lo_sum[:, :, 0] * inv_hw
        mid = jnp.maximum(pooled_hi @ w1h + pooled_lo @ w1l + b1, 0.0)
        cw_hi = (jax.nn.sigmoid(mid @ w2h + b2h) + 1.0).astype(cdt)[:, :, None]
        cw_lo = (jax.nn.sigmoid(mid @ w2l + b2l) + 1.0).astype(cdt)[:, :, None]

        # Pass 2: recompute the gate per hw chunk and write re-weighted output.
        out = pl.pallas_call(
            functools.partial(_apply_kernel, compute_dtype=cdt),
            out_shape=jax.ShapeDtypeStruct((B, C2, HW_pad), out_dtype),
            grid=(B, n_hw),
            in_specs=[
                pl.BlockSpec((1, C, HWt), lambda b, h: (b, 0, h)),
                pl.BlockSpec((1, 1, 1), lambda b, h: (b, 0, 0)),
                pl.BlockSpec((C, 1), lambda b, h: (0, 0)),
                pl.BlockSpec((1, C, 1), lambda b, h: (b, 0, 0)),
                pl.BlockSpec((1, C, 1), lambda b, h: (b, 0, 0)),
            ],
            out_specs=pl.BlockSpec((1, C2, HWt), lambda b, h: (b, 0, h)),
            compiler_params=pltpu.CompilerParams(
                dimension_semantics=("parallel", "parallel"),
                vmem_limit_bytes=vmem_limit),
        )(feat, const, wcf, cw_hi, cw_lo)

    if HW_pad != HW:
        out = out[:, :, :HW]
    return out.reshape(B, C2, H, W)


# --------------------------------------------------------------------------
# Pure-JAX reference + parameter builder + tests
# --------------------------------------------------------------------------

def _ref_forward(features, w, p):
    """Pure-JAX reference of the PyTorch forward (NCHW), BN inference mode."""
    B, C, H, W = features.shape
    gap = jnp.broadcast_to(w, features.shape)
    gapcat = jnp.concatenate([features, gap], axis=1)                    # (B, 2C, H, W)
    wdy = jnp.einsum("bchw,c->bhw", gapcat, p["cat_w"]) + p["cat_b"]
    scale = p["bn_gamma"] / jnp.sqrt(p["bn_var"] + p["bn_eps"])
    wdy = wdy * scale + (p["bn_beta"] - p["bn_mean"] * scale)
    s = jax.nn.sigmoid(jnp.maximum(wdy, 0.0))[:, None]                   # (B, 1, H, W)
    hl = jnp.concatenate([features * s, features * (1.0 - s)], axis=1)   # (B, 2C, H, W)
    pooled = jnp.mean(hl, axis=(2, 3))                                   # (B, 2C)
    mid = jnp.maximum(pooled @ p["conv1_w"].T + p["conv1_b"], 0.0)
    cw = jax.nn.sigmoid(mid @ p["conv2_w"].T + p["conv2_b"])[:, :, None, None]
    return hl * cw + hl


def make_params(in_channels, reduction_rate=16, key=None):
    C = in_channels
    Cr = C // reduction_rate
    keys = jax.random.split(key, 5)
    return {
        "cat_w": 0.1 * jax.random.normal(keys[0], (2 * C,), jnp.float32),
        "cat_b": jnp.float32(0.05),
        "bn_gamma": jnp.float32(1.2),
        "bn_beta": jnp.float32(-0.1),
        "bn_mean": jnp.float32(0.03),
        "bn_var": jnp.float32(0.9),
        "bn_eps": jnp.float32(1e-5),
        "conv1_w": 0.1 * jax.random.normal(keys[1], (Cr, 2 * C), jnp.float32),
        "conv1_b": 0.1 * jax.random.normal(keys[2], (Cr,), jnp.float32),
        "conv2_w": 0.1 * jax.random.normal(keys[3], (2 * C, Cr), jnp.float32),
        "conv2_b": 0.1 * jax.random.normal(keys[4], (2 * C,), jnp.float32),
    }


if __name__ == "__main__":
    key = jax.random.PRNGKey(0)
    k_feat, k_w, k_par, k_feat2, k_w2 = jax.random.split(key, 5)

    B, C, H, W = 2, 32, 16, 16            # in_channels=32, reduction_rate=16 -> mid=2
    params = make_params(C, reduction_rate=16, key=k_par)
    feats = jax.random.normal(k_feat, (B, C, H, W), jnp.float32)
    w = jax.random.normal(k_w, (B, C, 1, 1), jnp.float32)

    # Case 1: f32 I/O, B >= 2, HW multiple of 128 -> single-pass path.
    out = jax.block_until_ready(channel_attn_dy(feats, w, params))
    ref = _ref_forward(feats, w, params)
    assert out.shape == (B, 2 * C, H, W) and out.dtype == jnp.float32
    assert jnp.allclose(out, ref, rtol=1e-4, atol=1e-4), "f32 mismatch vs reference"

    # Case 2: bf16 I/O (bf16 elementwise path on v6e/v7x, f32 compute on v5e).
    out_bf16 = jax.block_until_ready(
        channel_attn_dy(feats.astype(jnp.bfloat16), w, params))
    ref_bf16 = _ref_forward(feats.astype(jnp.bfloat16).astype(jnp.float32), w, params)
    assert out_bf16.dtype == jnp.bfloat16
    assert jnp.allclose(out_bf16.astype(jnp.float32), ref_bf16,
                        rtol=3e-2, atol=3e-2), "bf16 mismatch vs reference"

    # Case 3: B = 1 -> HW-blocked two-pass path (pool pass + apply pass).
    out1 = jax.block_until_ready(channel_attn_dy(feats[:1], w[:1], params))
    ref1 = _ref_forward(feats[:1], w[:1], params)
    assert jnp.allclose(out1, ref1, rtol=1e-4, atol=1e-4), "two-pass mismatch"

    # Case 4: H*W (=49) not a multiple of 128 -> lane-padded layout.
    feats4 = jax.random.normal(k_feat2, (2, C, 7, 7), jnp.float32)
    w4 = jax.random.normal(k_w2, (2, C, 1, 1), jnp.float32)
    out4 = jax.block_until_ready(channel_attn_dy(feats4, w4, params))
    ref4 = _ref_forward(feats4, w4, params)
    assert out4.shape == (2, 2 * C, 7, 7)
    assert jnp.allclose(out4, ref4, rtol=1e-4, atol=1e-4), "lane-pad mismatch"

    print("KERNEL_OK")
</pallas_src>

<mosaic_0001>
module attributes {stable_mosaic.version = 11 : i64} {
  func.func @_single_pass_kernel(%arg0: i32, %arg1: memref<1x32x256xf32, #tpu.memory_space<vmem>>, %arg2: memref<1x1x1xf32, #tpu.memory_space<vmem>>, %arg3: memref<32x1xf32, #tpu.memory_space<vmem>>, %arg4: memref<32x2xf32, #tpu.memory_space<vmem>>, %arg5: memref<32x2xf32, #tpu.memory_space<vmem>>, %arg6: memref<1x2xf32, #tpu.memory_space<vmem>>, %arg7: memref<2x32xf32, #tpu.memory_space<vmem>>, %arg8: memref<2x32xf32, #tpu.memory_space<vmem>>, %arg9: memref<1x32xf32, #tpu.memory_space<vmem>>, %arg10: memref<1x32xf32, #tpu.memory_space<vmem>>, %arg11: memref<1x64x256xf32, #tpu.memory_space<vmem>>) attributes {dimension_semantics = [#tpu.dimension_semantics<parallel>], iteration_bounds = array<i64: 2>, scalar_prefetch = 0 : i64, scratch_operands = 0 : i64, tpu.core_type = #tpu.core_type<tc>, window_params = [{transform_indices = @transform_0, window_bounds = array<i64: 1, 32, 256>}, {transform_indices = @transform_1, window_bounds = array<i64: 1, 1, 1>}, {pipeline_mode = #tpu.pipeline_mode<synchronous>, transform_indices = @transform_2, window_bounds = array<i64: 32, 1>}, {pipeline_mode = #tpu.pipeline_mode<synchronous>, transform_indices = @transform_3, window_bounds = array<i64: 32, 2>}, {pipeline_mode = #tpu.pipeline_mode<synchronous>, transform_indices = @transform_4, window_bounds = array<i64: 32, 2>}, {pipeline_mode = #tpu.pipeline_mode<synchronous>, transform_indices = @transform_5, window_bounds = array<i64: 1, 2>}, {pipeline_mode = #tpu.pipeline_mode<synchronous>, transform_indices = @transform_6, window_bounds = array<i64: 2, 32>}, {pipeline_mode = #tpu.pipeline_mode<synchronous>, transform_indices = @transform_7, window_bounds = array<i64: 2, 32>}, {pipeline_mode = #tpu.pipeline_mode<synchronous>, transform_indices = @transform_8, window_bounds = array<i64: 1, 32>}, {pipeline_mode = #tpu.pipeline_mode<synchronous>, transform_indices = @transform_9, window_bounds = array<i64: 1, 32>}, {transform_indices = @transform_10, window_bounds = array<i64: 1, 64, 256>}]} {
    %c0 = arith.constant 0 : index
    %c0_0 = arith.constant 0 : index
    %c0_1 = arith.constant 0 : index
    %0 = vector.load %arg1[%c0, %c0_0, %c0_1] : memref<1x32x256xf32, #tpu.memory_space<vmem>>, vector<1x32x256xf32>
    %c0_2 = arith.constant 0 : index
    %c0_3 = arith.constant 0 : index
    %c0_4 = arith.constant 0 : index
    %1 = vector.load %arg2[%c0_2, %c0_3, %c0_4] : memref<1x1x1xf32, #tpu.memory_space<vmem>>, vector<1x1x1xf32>
    %c0_5 = arith.constant 0 : index
    %c0_6 = arith.constant 0 : index
    %2 = vector.load %arg3[%c0_5, %c0_6] : memref<32x1xf32, #tpu.memory_space<vmem>>, vector<32x1xf32>
    %3 = vector.shape_cast %2 : vector<32x1xf32> to vector<1x32x1xf32>
    %4 = vector.broadcast %3 : vector<1x32x1xf32> to vector<1x32x256xf32>
    %5 = arith.mulf %0, %4 : vector<1x32x256xf32>
    %cst = arith.constant dense<0.000000e+00> : vector<1x256xf32>
    %6 = vector.multi_reduction <add>, %5, %cst [1] : vector<1x32x256xf32> to vector<1x256xf32>
    %7 = vector.shape_cast %6 : vector<1x256xf32> to vector<1x1x256xf32>
    %8 = vector.broadcast %1 : vector<1x1x1xf32> to vector<1x1x256xf32>
    %9 = arith.addf %7, %8 : vector<1x1x256xf32>
    %cst_7 = arith.constant 0.000000e+00 : f32
    %10 = vector.broadcast %cst_7 : f32 to vector<1x1x256xf32>
    %11 = arith.maximumf %9, %10 : vector<1x1x256xf32>
    %12 = arith.negf %11 : vector<1x1x256xf32>
    %13 = math.exp %12 : vector<1x1x256xf32>
    %cst_8 = arith.constant 1.000000e+00 : f32
    %14 = vector.broadcast %cst_8 : f32 to vector<1x1x256xf32>
    %15 = arith.addf %14, %13 : vector<1x1x256xf32>
    %16 = arith.divf %14, %15 : vector<1x1x256xf32>
    %17 = vector.broadcast %16 : vector<1x1x256xf32> to vector<1x32x256xf32>
    %18 = arith.mulf %0, %17 : vector<1x32x256xf32>
    %19 = arith.subf %0, %18 : vector<1x32x256xf32>
    %cst_9 = arith.constant dense<0.000000e+00> : vector<1x32xf32>
    %20 = vector.multi_reduction <add>, %18, %cst_9 [2] : vector<1x32x256xf32> to vector<1x32xf32>
    %cst_10 = arith.constant 3.906250e-03 : f32
    %21 = vector.broadcast %cst_10 : f32 to vector<1x32xf32>
    %22 = arith.mulf %20, %21 : vector<1x32xf32>
    %cst_11 = arith.constant dense<0.000000e+00> : vector<1x32xf32>
    %23 = vector.multi_reduction <add>, %19, %cst_11 [2] : vector<1x32x256xf32> to vector<1x32xf32>
    %cst_12 = arith.constant 3.906250e-03 : f32
    %24 = vector.broadcast %cst_12 : f32 to vector<1x32xf32>
    %25 = arith.mulf %23, %24 : vector<1x32xf32>
    %c0_13 = arith.constant 0 : index
    %c0_14 = arith.constant 0 : index
    %26 = vector.load %arg4[%c0_13, %c0_14] : memref<32x2xf32, #tpu.memory_space<vmem>>, vector<32x2xf32>
    %cst_15 = arith.constant dense<0.000000e+00> : vector<1x2xf32>
    %27 = tpu.matmul %22, %26, %cst_15 {dimension_numbers = #tpu.dot_dimension_numbers<[1], [0], [0], [1], [0, 0, 1, 1], [], []>} : vector<1x32xf32>, vector<32x2xf32>, vector<1x2xf32> -> vector<1x2xf32>
    %c0_16 = arith.constant 0 : index
    %c0_17 = arith.constant 0 : index
    %28 = vector.load %arg5[%c0_16, %c0_17] : memref<32x2xf32, #tpu.memory_space<vmem>>, vector<32x2xf32>
    %cst_18 = arith.constant dense<0.000000e+00> : vector<1x2xf32>
    %29 = tpu.matmul %25, %28, %cst_18 {dimension_numbers = #tpu.dot_dimension_numbers<[1], [0], [0], [1], [0, 0, 1, 1], [], []>} : vector<1x32xf32>, vector<32x2xf32>, vector<1x2xf32> -> vector<1x2xf32>
    %30 = arith.addf %27, %29 : vector<1x2xf32>
    %c0_19 = arith.constant 0 : index
    %c0_20 = arith.constant 0 : index
    %31 = vector.load %arg6[%c0_19, %c0_20] : memref<1x2xf32, #tpu.memory_space<vmem>>, vector<1x2xf32>
    %32 = arith.addf %30, %31 : vector<1x2xf32>
    %cst_21 = arith.constant 0.000000e+00 : f32
    %33 = vector.broadcast %cst_21 : f32 to vector<1x2xf32>
    %34 = arith.maximumf %32, %33 : vector<1x2xf32>
    %c0_22 = arith.constant 0 : index
    %c0_23 = arith.constant 0 : index
    %35 = vector.load %arg7[%c0_22, %c0_23] : memref<2x32xf32, #tpu.memory_space<vmem>>, vector<2x32xf32>
    %cst_24 = arith.constant dense<0.000000e+00> : vector<1x32xf32>
    %36 = tpu.matmul %34, %35, %cst_24 {dimension_numbers = #tpu.dot_dimension_numbers<[1], [0], [0], [1], [0, 0, 1, 1], [], []>} : vector<1x2xf32>, vector<2x32xf32>, vector<1x32xf32> -> vector<1x32xf32>
    %c0_25 = arith.constant 0 : index
    %c0_26 = arith.constant 0 : index
    %37 = vector.load %arg9[%c0_25, %c0_26] : memref<1x32xf32, #tpu.memory_space<vmem>>, vector<1x32xf32>
    %38 = arith.addf %36, %37 : vector<1x32xf32>
    %39 = arith.negf %38 : vector<1x32xf32>
    %40 = math.exp %39 : vector<1x32xf32>
    %cst_27 = arith.constant 1.000000e+00 : f32
    %41 = vector.broadcast %cst_27 : f32 to vector<1x32xf32>
    %42 = arith.addf %41, %40 : vector<1x32xf32>
    %43 = arith.divf %41, %42 : vector<1x32xf32>
    %cst_28 = arith.constant 1.000000e+00 : f32
    %44 = vector.broadcast %cst_28 : f32 to vector<1x32xf32>
    %45 = arith.addf %43, %44 : vector<1x32xf32>
    %c0_29 = arith.constant 0 : index
    %c0_30 = arith.constant 0 : index
    %46 = vector.load %arg8[%c0_29, %c0_30] : memref<2x32xf32, #tpu.memory_space<vmem>>, vector<2x32xf32>
    %cst_31 = arith.constant dense<0.000000e+00> : vector<1x32xf32>
    %47 = tpu.matmul %34, %46, %cst_31 {dimension_numbers = #tpu.dot_dimension_numbers<[1], [0], [0], [1], [0, 0, 1, 1], [], []>} : vector<1x2xf32>, vector<2x32xf32>, vector<1x32xf32> -> vector<1x32xf32>
    %c0_32 = arith.constant 0 : index
    %c0_33 = arith.constant 0 : index
    %48 = vector.load %arg10[%c0_32, %c0_33] : memref<1x32xf32, #tpu.memory_space<vmem>>, vector<1x32xf32>
    %49 = arith.addf %47, %48 : vector<1x32xf32>
    %50 = arith.negf %49 : vector<1x32xf32>
    %51 = math.exp %50 : vector<1x32xf32>
    %cst_34 = arith.constant 1.000000e+00 : f32
    %52 = vector.broadcast %cst_34 : f32 to vector<1x32xf32>
    %53 = arith.addf %52, %51 : vector<1x32xf32>
    %54 = arith.divf %52, %53 : vector<1x32xf32>
    %cst_35 = arith.constant 1.000000e+00 : f32
    %55 = vector.broadcast %cst_35 : f32 to vector<1x32xf32>
    %56 = arith.addf %54, %55 : vector<1x32xf32>
    %57 = vector.shape_cast %45 : vector<1x32xf32> to vector<1x32x1xf32>
    %58 = vector.broadcast %57 : vector<1x32x1xf32> to vector<1x32x256xf32>
    %59 = arith.mulf %18, %58 : vector<1x32x256xf32>
    %c0_36 = arith.constant 0 : index
    %c0_37 = arith.constant 0 : index
    %c0_38 = arith.constant 0 : index
    %60 = vector.load %arg11[%c0_36, %c0_37, %c0_38] : memref<1x64x256xf32, #tpu.memory_space<vmem>>, vector<1x32x256xf32>
    tpu.vector_store %arg11[%c0_36, %c0_37, %c0_38], %59 {strides = array<i32>} : memref<1x64x256xf32, #tpu.memory_space<vmem>>, vector<1x32x256xf32>,
    %61 = vector.shape_cast %56 : vector<1x32xf32> to vector<1x32x1xf32>
    %62 = vector.broadcast %61 : vector<1x32x1xf32> to vector<1x32x256xf32>
    %63 = arith.mulf %19, %62 : vector<1x32x256xf32>
    %c0_39 = arith.constant 0 : index
    %c32 = arith.constant 32 : index
    %c0_40 = arith.constant 0 : index
    %64 = vector.load %arg11[%c0_39, %c32, %c0_40] : memref<1x64x256xf32, #tpu.memory_space<vmem>>, vector<1x32x256xf32>
    tpu.vector_store %arg11[%c0_39, %c32, %c0_40], %63 {strides = array<i32>} : memref<1x64x256xf32, #tpu.memory_space<vmem>>, vector<1x32x256xf32>,
    return
  }
  func.func @transform_0(%arg0: i32) -> (i32, i32, i32) {
    %c0_i32 = arith.constant 0 : i32
    %c0_i32_0 = arith.constant 0 : i32
    %c0_i32_1 = arith.constant 0 : i32
    return %arg0, %c0_i32, %c0_i32_0 : i32, i32, i32
  }
  func.func @transform_1(%arg0: i32) -> (i32, i32, i32) {
    %c0_i32 = arith.constant 0 : i32
    %c0_i32_0 = arith.constant 0 : i32
    %c0_i32_1 = arith.constant 0 : i32
    return %arg0, %c0_i32, %c0_i32_0 : i32, i32, i32
  }
  func.func @transform_2(%arg0: i32) -> (i32, i32) {
    %c0_i32 = arith.constant 0 : i32
    %c0_i32_0 = arith.constant 0 : i32
    %c0_i32_1 = arith.constant 0 : i32
    return %c0_i32, %c0_i32_0 : i32, i32
  }
  func.func @transform_3(%arg0: i32) -> (i32, i32) {
    %c0_i32 = arith.constant 0 : i32
    %c0_i32_0 = arith.constant 0 : i32
    %c0_i32_1 = arith.constant 0 : i32
    return %c0_i32, %c0_i32_0 : i32, i32
  }
  func.func @transform_4(%arg0: i32) -> (i32, i32) {
    %c0_i32 = arith.constant 0 : i32
    %c0_i32_0 = arith.constant 0 : i32
    %c0_i32_1 = arith.constant 0 : i32
    return %c0_i32, %c0_i32_0 : i32, i32
  }
  func.func @transform_5(%arg0: i32) -> (i32, i32) {
    %c0_i32 = arith.constant 0 : i32
    %c0_i32_0 = arith.constant 0 : i32
    %c0_i32_1 = arith.constant 0 : i32
    return %c0_i32, %c0_i32_0 : i32, i32
  }
  func.func @transform_6(%arg0: i32) -> (i32, i32) {
    %c0_i32 = arith.constant 0 : i32
    %c0_i32_0 = arith.constant 0 : i32
    %c0_i32_1 = arith.constant 0 : i32
    return %c0_i32, %c0_i32_0 : i32, i32
  }
  func.func @transform_7(%arg0: i32) -> (i32, i32) {
    %c0_i32 = arith.constant 0 : i32
    %c0_i32_0 = arith.constant 0 : i32
    %c0_i32_1 = arith.constant 0 : i32
    return %c0_i32, %c0_i32_0 : i32, i32
  }
  func.func @transform_8(%arg0: i32) -> (i32, i32) {
    %c0_i32 = arith.constant 0 : i32
    %c0_i32_0 = arith.constant 0 : i32
    %c0_i32_1 = arith.constant 0 : i32
    return %c0_i32, %c0_i32_0 : i32, i32
  }
  func.func @transform_9(%arg0: i32) -> (i32, i32) {
    %c0_i32 = arith.constant 0 : i32
    %c0_i32_0 = arith.constant 0 : i32
    %c0_i32_1 = arith.constant 0 : i32
    return %c0_i32, %c0_i32_0 : i32, i32
  }
  func.func @transform_10(%arg0: i32) -> (i32, i32, i32) {
    %c0_i32 = arith.constant 0 : i32
    %c0_i32_0 = arith.constant 0 : i32
    %c0_i32_1 = arith.constant 0 : i32
    return %arg0, %c0_i32, %c0_i32_0 : i32, i32, i32
  }
}

</mosaic_0001>

<bundles_post_ra>
// kernel: tpu_custom_call.1
= control target key start
LH: loop header
LB: loop body
LE: loop exit
PB: predicated region body
PF: predicated region fallthrough
CT: control target
= control target key end

     0   :  { %15 = vsyncpa [#allocation3], 0  ;;  %s1509_s0 = inlined_call_operand.hbm [shape: f32[2,32,256], index: 0, kind: input, shape index: {}]   ;;  %s1510_s1 = inlined_call_operand.vmem [shape: f32[2,1,1], index: 1, kind: input, shape index: {}]   ;;  %s1511_s2 = inlined_call_operand.vmem [shape: f32[32,1], index: 2, kind: input, shape index: {}]   ;;  %s1512_s3 = inlined_call_operand.vmem [shape: f32[32,2], index: 3, kind: input, shape index: {}]   ;;  %s1513_s4 = inlined_call_operand.vmem [shape: f32[32,2], index: 4, kind: input, shape index: {}]   ;;  %s1514_s5 = inlined_call_operand.vmem [shape: f32[1,2], index: 5, kind: input, shape index: {}]   ;;  %s1515_s6 = inlined_call_operand.vmem [shape: f32[2,32], index: 6, kind: input, shape index: {}]   ;;  %s1516_s7 = inlined_call_operand.vmem [shape: f32[2,32], index: 7, kind: input, shape index: {}]   ;;  %s1517_s8 = inlined_call_operand.vmem [shape: f32[1,32], index: 8, kind: input, shape index: {}]   ;;  %s1518_s9 = inlined_call_operand.vmem [shape: f32[1,32], index: 9, kind: input, shape index: {}]   ;;  %s1519_s10 = inlined_call_operand.hbm [shape: f32[2,64,256], index: 10, kind: output, shape index: {}]  }
   0x1   :  { %17 = vsyncpa [#allocation3 + $0x1], 0 }
   0x2   :  { %18 = vsyncpa [#allocation4], 0 }
   0x3   :  { %20 = vsyncpa [#allocation4 + $0x1], 0  ;;  %s1172_s13 = smov 0   ;;  %s1174_s14 = smov 0  }
   0x4   :  { %s1176_s15 = smov 0   ;;  %s1178_s16 = smov 0  }
   0x5 LB: > { %1524 = sst [smem:[#allocation8_spill]] %s1106_s15  ;;  %s1193_s17 = sadd.s32 4294967295, %s1110_s16   ;;  %s1110_s16 = sphi %s1178_s16, %s1535_s16   ;;  %s1106_s15 = sphi %s1176_s15, %s1537_s15   ;;  %s1102_s14 = sphi %s1174_s14, %s1539_s14   ;;  %s1098_s13 = sphi %s1172_s13, %s1538_s13  }
   0x6   : > { %s910_s18 = sadd.s32 4294967294, %s1110_s16   ;;  %s1197_s19 = sadd.s32 1, %s1110_s16  }
   0x7   : > { %1525 = sst [smem:[#allocation9_spill]] %s1197_s19  ;;  %s33_s20 = sadd.s32 1, %s1106_s15 }
   0x8   : > { %s30_s21 = ssub.s32 %s1110_s16, %s1197_s19  ;;  %p40_p0 = scmp.ne.s32.totalorder %s1106_s15, %s1102_s14 }
   0x9   : > { %p31_p1 = scmp.eq.s32.totalorder %s30_s21, 0  ;;  %p41_p2 = scmp.eq.s32.totalorder %s1110_s16, 0 }
   0xa   : > { %p46_p3 = scmp.ne.s32.totalorder %s1102_s14, %s1098_s13  ;;  %p47_p4 = scmp.eq.s32.totalorder %s1193_s17, 0 }
   0xb   : > { %s1209_s22 = scalar_select %p31_p1, %s1106_s15, %s33_s20  }
   0xc   : > { %p1211_p5 = por %p41_p2, %p40_p0  ;;  %p1215_p6 = por %p47_p4, %p46_p3 }
   0xd   : > { %1526 = sst [smem:[#allocation10_spill]] %s1209_s22  ;;  %p264_p7 = scmp.eq.s32.totalorder %s1193_s17, 1 }
   0xe   : > { %p270_p8 = scmp.eq.s32.totalorder %s910_s18, 1  ;;  %p948_p10 = scmp.lt.s32.totalorder %s1110_s16, 2 }
   0xf   : > { %p1222_p11 = por %p264_p7, %p40_p0  ;;  %s314_s27 = sand.u32 1, %s1106_s15  }
  0x10   : > { %p1226_p12 = por %p270_p8, %p46_p3  ;;  %s934_s28 = sshll.u32 %s1110_s16, 6 }
  0x11   : > { %s913_s29 = sshll.u32 %s314_s27, 6  ;;  %s323_s12 = scalar_lea.hbm %s1509_s0, %s934_s28 }
  0x12   : > { %s1530_s26 = scalar_select %p1226_p12, 1, 0 }
  0x13   : > { %s324_s20 = sshll.u32 %s323_s12, 4  ;;  %s318_s18 = scalar_lea.vmem [#allocation2], %s913_s29  ;;  %s325_s20 = int_to_ptr.hbm [resolvable:$true] %s324_s20 }
  0x14   : > { %1531 = sst [smem:[#allocation11_spill]] %s1530_s26  ;;  %s326_s21 = sshll.u32 %s318_s18, 4  ;;  %s327_s21 = int_to_ptr.vmem [resolvable:$true] %s326_s21 }
  0x15   : > { %p1237_p13 = pnand %p948_p10, %p1211_p5  ;;  %p916_p0 = scmp.ge.s32.totalorder %s1110_s16, 1 }
  0x16   : > { %p340_p1 = scmp.lt.s32.totalorder %s1110_s16, 3  ;;  %s315_s15 = scalar_lea.sflag [#allocation3], %s314_s27 }
  0x17   : > { %s1014_s19 = sshra.s32 %s325_s20, 4  ;;  %p1018_p3 = pneg %p1237_p13  ;;  %s1015_s19 = int_to_ptr.hbm [resolvable:$true] %s1014_s19 }
  0x18   : > { %s1016_s26 = scalar_lea.hbm %s1015_s19, 64  ;;  %s1021_s23 = scalar_lea.hbm %s1509_s0, 128 }
  0x19   : > { %p1017_p2 = scmp.ne.s32.totalorder %s1015_s19, %s1016_s26  ;;  %p1022_p5 = scmp.lt.s32.totalorder %s1015_s19, %s1509_s0 }
  0x1a   : > { %p1023_p8 = scmp.lt.s32.totalorder %s1021_s23, %s1016_s26 }
  0x1b   : > { %p1019_p4 = pnand %p1018_p3, %p1017_p2 }
  0x1c   : > { %p1024_p10 = por %p1023_p8, %p1022_p5 }
  0x1d   : > { %p1020_p7 = pneg %p1019_p4 }
  0x1f   : > { %p1025_p9 = pnand %p1024_p10, %p1020_p7 }
  0x21   : > { %1028 = shalt.err (!%p1025_p9)
}
  0x22   : > { %s1112_s27 = smov 256   ;;  %s1113_s12 = smov 16  }
  0x23   : > { %943 = dma.hbm_to_vmem [thread:$0]  (!%p1237_p13), %s325_s20, 1024, %s327_s21, %s315_s15, %s1112_s27, %s1112_s27, %s1113_s12  }
  0x24   : > { %p341_p2 = pnand %p916_p0, %p340_p1 }
  0x25   : > { %s1258_s18 = sand.u32 (!%p341_p2), 1, %s1102_s14  }
  0x26   : > { %344 = sbr.rel (%p341_p2) target bundleno = 824 (0x338), region = 60  ;;  %s917_s19 = sshll.u32 (!%p341_p2), %s1258_s18, 6 }
  0x27   : > { %s347_s26 = scalar_lea.sflag (!%p341_p2), [#allocation3], %s1258_s18  ;;  %s1262_s28 = scalar_lea.vmem (!%p341_p2), [#allocation2], %s917_s19 }
  0x2b   : > { %1089 = dma.done.wait (%p1215_p6), %s347_s26, 1024  }
  0x2c   : > { %1091 = vsyncadd (%p1215_p6), %s347_s26, 4294966272  ;;  %p391_p9 = scmp.lt.s32.totalorder %s1193_s17, 1  ;;  %v1114_v0 = vmov 0   ;;  %v405_v1 = vld [vmem:[%s1511_s2 + $0x10] sm:$0xff]  ;;  %v403_v2 = vld [vmem:[%s1511_s2] sm:$0xff]  ;;  %vm566_vm8 = vcmask 130112  }
  0x2d   : > { %988 = vset.pattern.permute.xlu1 %v1114_v0  ;;  %987 = vset.pattern.permute.xlu0 %v1114_v0  ;;  %v406_v4 = vld [vmem:[%s1511_s2 + $0x18] sm:$0xff]  ;;  %v404_v5 = vld [vmem:[%s1511_s2 + $0x8] sm:$0xff]  ;;  %v1286_v8 = vld [vmem:[%s1262_s28] sm:$0xff]  ;;  %vm570_vm9 = vcmask 195712   ;;  %vm574_vm10 = vcmask 261312   ;;  %vm576_vm11 = vcmask 261120  }
  0x2e   : > { %989 = vset.pattern.permute.xlu2 %v1114_v0  ;;  %s392_s15 = scalar_select %p391_p9, %s1193_s17, 1  ;;  %419 = vperm.xlu1 %988, %v405_v1   ;;  %v1289_v9 = vld [vmem:[%s1262_s28 + $0x8] sm:$0xff]  ;;  %v1292_v10 = vld [vmem:[%s1262_s28 + $0x10] sm:$0xff]  ;;  %v1295_v11 = vld [vmem:[%s1262_s28 + $0x18] sm:$0xff]  ;;  %vm641_vm12 = vcmask 1041408   ;;  %vm637_vm13 = vcmask 15360  }
  0x2f   : > { %409 = vperm.xlu0 %987, %v403_v2   ;;  %v1298_v12 = vld [vmem:[%s1262_s28 + $0x20] sm:$0xff]  ;;  %v1301_v13 = vld [vmem:[%s1262_s28 + $0x28] sm:$0xff]  ;;  %v1308_v20 = vld [vmem:[%s1262_s28 + $0x30] sm:$0xff]  ;;  %s918_s12 = sshll.u32 %s1258_s18, 7  ;;  %s935_s26 = sshll.u32 %s1193_s17, 7 }
  0x30   : > { %s393_s21 = scalar_lea.vmem %s1510_s1, %s392_s15  ;;  %v1311_v21 = vld [vmem:[%s1262_s28 + $0x38] sm:$0xff]  ;;  %s1443_s19 = scalar_lea.vmem [#allocation5], %s918_s12 }
  0x31   : > { %v402_v3 = vld [vmem:[%s393_s21] sm:$0x1]  ;;  %s824_s22 = scalar_lea.hbm %s1519_s10, %s935_s26  ;;  %s825_s20 = sshll.u32 %s1443_s19, 4  ;;  %s826_s20 = int_to_ptr.vmem [resolvable:$true] %s825_s20 }
  0x32   : > { %455 = vperm.xlu2 %989, %v402_v3   ;;  %s827_s21 = sshll.u32 %s824_s22, 4  ;;  %s813_s29 = scalar_lea.sflag [#allocation4], %s1258_s18  ;;  %s828_s21 = int_to_ptr.hbm [resolvable:$true] %s827_s21 }
  0x33   : > { %s1058_s23 = sshra.s32 %s828_s21, 4  ;;  %s1064_s11 = scalar_lea.hbm %s1519_s10, 256  ;;  %s1059_s23 = int_to_ptr.hbm [resolvable:$true] %s1058_s23 }
  0x34   : > { %s1060_s17 = scalar_lea.hbm %s1059_s23, 128  ;;  %p1065_p1 = scmp.lt.s32.totalorder %s1059_s23, %s1519_s10 }
  0x35   : > { %p1061_p6 = scmp.ne.s32.totalorder %s1059_s23, %s1060_s17  ;;  %p1066_p3 = scmp.lt.s32.totalorder %s1064_s11, %s1060_s17 }
  0x36   : > { %424 = vperm.xlu1 %988, %v406_v4  }
  0x37   : > { %414 = vperm.xlu0 %987, %v404_v5   ;;  %p1062_p13 = pnand %p1061_p6, %p1222_p11  ;;  %p1067_p4 = por %p1066_p3, %p1065_p1 }
  0x39   : > { %p1063_p0 = pneg %p1062_p13 }
  0x3b   : > { %p1068_p7 = pnand %p1067_p4, %p1063_p0 }
  0x8c   : > { %v456_v38 = vpop.permute.xlu2 %455 }
  0x8d   : > { %v458_v43 = vperm.slane %v456_v38, 0 }
  0xa0   : > { %v420_v6 = vpop.permute.xlu1 %419 }
  0xa1   : > { %v410_v7 = vpop.permute.xlu0 %409  ;;  %v431_v22 = vmul.f32 %v420_v6, %v1298_v12  ;;  %v432_v23 = vmul.f32 %v420_v6, %v1301_v13 }
  0xa2   : > { %v427_v15 = vmul.f32 %v410_v7, %v1286_v8  ;;  %v428_v16 = vmul.f32 %v410_v7, %v1289_v9 }
  0xa8   : > { %v425_v19 = vpop.permute.xlu1 %424 }
  0xa9   : > { %v415_v14 = vpop.permute.xlu0 %414  ;;  %v433_v26 = vmul.f32 %v425_v19, %v1308_v20  ;;  %v434_v27 = vmul.f32 %v425_v19, %v1311_v21 }
  0xaa   : > { %v429_v17 = vmul.f32 %v415_v14, %v1292_v10  ;;  %v430_v18 = vmul.f32 %v415_v14, %v1295_v11 }
  0xac   : > { %v435_v24 = vadd.f32 %v429_v17, %v427_v15  ;;  %v444_v25 = vadd.f32 %v430_v18, %v428_v16 }
  0xae   : > { %v436_v28 = vadd.f32 %v435_v24, %v431_v22  ;;  %v445_v29 = vadd.f32 %v444_v25, %v432_v23 }
  0xb0   : > { %v437_v30 = vadd.f32 %v436_v28, %v433_v26  ;;  %v446_v31 = vadd.f32 %v445_v29, %v434_v27 }
  0xb2   : > { %v438_v32 = vrot.slane %v437_v30, 4  ;;  %v447_v33 = vrot.slane %v446_v31, 4 }
  0xb4   : > { %v439_v34 = vadd.f32 %v438_v32, %v437_v30  ;;  %v448_v35 = vadd.f32 %v447_v33, %v446_v31 }
  0xb6   : > { %v440_v36 = vrot.slane %v439_v34, 2  ;;  %v449_v37 = vrot.slane %v448_v35, 2 }
  0xb8   : > { %v441_v39 = vadd.f32 %v440_v36, %v439_v34  ;;  %v450_v40 = vadd.f32 %v449_v37, %v448_v35 }
  0xba   : > { %v442_v41 = vrot.slane %v441_v39, 1  ;;  %v451_v42 = vrot.slane %v450_v40, 1 }
  0xbc   : > { %v443_v44 = vadd.f32 %v442_v41, %v441_v39  ;;  %v452_v45 = vadd.f32 %v451_v42, %v450_v40  ;;  %v551_v39 = vld [vmem:[%s1512_s3 + $0x10] sm:$0xff]  ;;  %v556_v40 = vld [vmem:[%s1513_s4 + $0x18] sm:$0xff]  ;;  %v554_v42 = vld [vmem:[%s1513_s4 + $0x8] sm:$0xff] }
  0xbd   : > { %591 = vmatpush.msra.mxu0 %v556_v40  ;;  %v555_v41 = vld [vmem:[%s1513_s4 + $0x10] sm:$0xff] }
  0xbe   : > { %v459_v46 = vadd.f32 %v458_v43, %v443_v44  ;;  %v460_v47 = vadd.f32 %v458_v43, %v452_v45  ;;  %v561_v43 = vlaneseq  ;;  %v553_v44 = vld [vmem:[%s1513_s4] sm:$0xff] }
  0xbf   : > { %592 = vmatpush.msra.mxu0 %v555_v41 }
  0xc0   : > { %v461_v48 = vmax.f32 %v459_v46, 0.0  ;;  %v462_v49 = vmax.f32 %v460_v47, 0.0  ;;  %v562_v45 = vand.u32 127, %v561_v43 }
  0xc1   : > { %593 = vmatpush.msra.mxu0 %v554_v42  ;;  %v636_v42 = vld [vmem:[%s1517_s8] sm:$0x1] }
  0xc2   : > { %v919_v50 = vmul.f32 -1.442695, %v461_v48  ;;  %v920_v51 = vmul.f32 -1.442695, %v462_v49  ;;  %v564_v49 = vadd.s32 4294967288, %v562_v45 }
  0xc3   : > { %594 = vmatpush.msra.mxu0 %v553_v44  ;;  %v686_v44 = vld [vmem:[%s1518_s9] sm:$0x1] }
  0xc4   : > { %998 = vpow2.f32 %v919_v50 }
  0xc5   : > { %1000 = vpow2.f32 %v920_v51 }
  0xca   : > { %v999_v52 = vpop.eup %998 }
  0xcb   : > { %v1001_v53 = vpop.eup %1000  ;;  %v469_v54 = vadd.f32 1.0, %v999_v52  ;;  %v568_v52 = vadd.s32 4294967280, %v562_v45 }
  0xcc   : > { %v470_v55 = vadd.f32 1.0, %v1001_v53 }
  0xcd   : > { %1002 = vrcp.f32 %v469_v54  ;;  %v482_v62 = vand.u32 2147483648, %v469_v54  ;;  %v480_v0 = vand.u32 2147483647, %v469_v54  ;;  %vm476_vm2 = vweird.f32 %v469_v54 }
  0xce   : > { %1004 = vrcp.f32 %v470_v55  ;;  %v497_v1 = vand.u32 2147483648, %v470_v55  ;;  %v495_v3 = vand.u32 2147483647, %v470_v55  ;;  %vm491_vm4 = vweird.f32 %v470_v55 }
  0xcf   : > { %v483_v5 = vor.u32 1.1754944e-38, %v482_v62  ;;  %vm481_vm5 = vcmp.eq.f32.partialorder %v480_v0, 8.507059e+37 }
  0xd0   : > { %v498_v14 = vor.u32 1.1754944e-38, %v497_v1  ;;  %vm496_vm7 = vcmp.eq.f32.partialorder %v495_v3, 8.507059e+37 }
  0xd3   : > { %v1003_v56 = vpop.eup %1002 }
  0xd4   : > { %v1005_v57 = vpop.eup %1004  ;;  %v472_v58 = vmul.f32 %v1003_v56, %v469_v54  ;;  %vm477_vm0 = vweird.f32 %v1003_v56 }
  0xd5   : > { %v487_v59 = vmul.f32 %v1005_v57, %v470_v55  ;;  %vm492_vm1 = vweird.f32 %v1005_v57  ;;  %vm478_vm3 = vmor %vm476_vm2, %vm477_vm0 }
  0xd6   : > { %v473_v60 = vsub.f32 1.0, %v472_v58  ;;  %vm493_vm6 = vmor %vm491_vm4, %vm492_vm1 }
  0xd7   : > { %v488_v61 = vsub.f32 1.0, %v487_v59 }
  0xd8   : > { %v474_v63 = vmul.f32 %v1003_v56, %v473_v60 }
  0xd9   : > { %v489_v2 = vmul.f32 %v1005_v57, %v488_v61 }
  0xda   : > { %v475_v4 = vadd.f32 %v1003_v56, %v474_v63 }
  0xdb   : > { %v490_v6 = vadd.f32 %v1005_v57, %v489_v2 }
  0xdc   : > { %v479_v7 = vsel %vm478_vm3, %v1003_v56, %v475_v4 }
  0xdd   : > { %v484_v15 = vsel %vm481_vm5, %v483_v5, %v479_v7  ;;  %v494_v16 = vsel %vm493_vm6, %v1005_v57, %v490_v6  ;;  %v572_v57 = vadd.s32 4294967272, %v562_v45 }
  0xde   : > { %v499_v17 = vsel %vm496_vm7, %v498_v14, %v494_v16  ;;  %v1318_v18 = vmul.f32 %v484_v15, %v1292_v10  ;;  %v1321_v19 = vmul.f32 %v484_v15, %v1286_v8  ;;  %v1334_v25 = vmul.f32 %v484_v15, %v1298_v12 }
  0xdf   : > { %v1324_v22 = vmul.f32 %v499_v17, %v1295_v11  ;;  %v1327_v23 = vmul.f32 %v499_v17, %v1289_v9  ;;  %v1345_v29 = vmul.f32 %v499_v17, %v1301_v13  ;;  %v1361_v32 = vmul.f32 %v499_v17, %v1311_v21 }
  0xe0   : > { %v1331_v24 = vsub.f32 %v1286_v8, %v1321_v19  ;;  %v1351_v30 = vsub.f32 %v1298_v12, %v1334_v25 }
  0xe1   : > { %v520_v26 = vadd.f32 %v1324_v22, %v1318_v18  ;;  %v517_v27 = vadd.f32 %v1327_v23, %v1321_v19  ;;  %v1342_v28 = vsub.f32 %v1289_v9, %v1327_v23  ;;  %v1355_v31 = vsub.f32 %v1301_v13, %v1345_v29 }
  0xe2   : > { %v1358_v9 = vmul.f32 %v484_v15, %v1308_v20  ;;  %v523_v34 = vadd.f32 %v1345_v29, %v1334_v25  ;;  %v1371_v13 = vsub.f32 %v1292_v10, %v1318_v18  ;;  %v1375_v35 = vsub.f32 %v1295_v11, %v1324_v22  ;;  %v552_v11 = vld [vmem:[%s1512_s3 + $0x18] sm:$0xff] }
  0xe3   : > { %521 = vadd.xlane.f32.xlu0 %v520_v26  ;;  %518 = vadd.xlane.f32.xlu2 %v517_v27  ;;  %v533_v8 = vadd.f32 %v1342_v28, %v1331_v24  ;;  %v539_v33 = vadd.f32 %v1355_v31, %v1351_v30  ;;  %v1385_v38 = vsub.f32 %v1311_v21, %v1361_v32  ;;  %v549_v21 = vld [vmem:[%s1512_s3] sm:$0xff] }
  0xe4   : > { %v526_v12 = vadd.f32 %v1361_v32, %v1358_v9  ;;  %v536_v36 = vadd.f32 %v1375_v35, %v1371_v13  ;;  %v1381_v37 = vsub.f32 %v1308_v20, %v1358_v9  ;;  %624 = vmatpush.msra.mxu1 %v552_v11  ;;  %v550_v20 = vld [vmem:[%s1512_s3 + $0x8] sm:$0xff] }
  0xe5   : > { %534 = vadd.xlane.f32.xlu1 %v533_v8 }
  0xe6   : > { %v542_v10 = vadd.f32 %v1385_v38, %v1381_v37  ;;  %625 = vmatpush.msra.mxu1 %v551_v39 }
  0xe8   : > { %626 = vmatpush.msra.mxu1 %v550_v20 }
  0xea   : > { %627 = vmatpush.msra.mxu1 %v549_v21  ;;  %v732_v21 = vshrl.u32 %v561_v43, 7 }
  0xeb   : > { %540 = vadd.xlane.f32.xlu0 %v539_v33  ;;  %524 = vadd.xlane.f32.xlu2 %v523_v34  ;;  %v635_v33 = vld [vmem:[%s1515_s6] sm:$0x3] }
  0xec   : > { %v685_v34 = vld [vmem:[%s1516_s7] sm:$0x3]  ;;  %923 = vmatpush.msk.msra.mxu2 %vm641_vm12, %v635_v33  ;;  %v1430_v40 = vadd.s32 8, %v732_v21  ;;  %990 = vset.pattern.permute.xlu0 %v732_v21  ;;  %v745_v41 = vadd.s32 16, %v732_v21 }
  0xed   : > { %527 = vadd.xlane.f32.xlu1 %v526_v12  ;;  %926 = vmatpush.msk.msra.mxu3 %vm641_vm12, %v685_v34 }
  0xee   : > { %991 = vset.pattern.permute.xlu1 %v1430_v40  ;;  %992 = vset.pattern.permute.xlu2 %v745_v41 }
  0xf3   : > { %537 = vadd.xlane.f32.xlu2 %v536_v36 }
  0xfb   : > { %543 = vadd.xlane.f32.xlu2 %v542_v10  ;;  %v632_v10 = vld [vmem:[%s1514_s5] sm:$0x1] }
 0x156   : > { %v519_v46 = vpop.xlane.xlu2 %518  ;;  %v522_v47 = vpop.xlane.xlu0 %521 }
 0x157   : > { %v530_v50 = vmul.f32 0.00390625, %v522_v47  ;;  %v529_v51 = vmul.f32 0.00390625, %v519_v46 }
 0x158   : > { %v535_v48 = vpop.xlane.xlu1 %534 }
 0x159   : > { %v604_v53 = vperm.slane %v530_v50, %v564_v49  ;;  %v603_v54 = vperm.slane %v529_v51, %v562_v45  ;;  %v545_v3 = vmul.f32 0.00390625, %v535_v48 }
 0x15b   : > { %v605_v61 = vsel %vm566_vm8, %v604_v53, %v603_v54  ;;  %v563_v7 = vperm.slane %v545_v3, %v562_v45 }
 0x15e   : > { %v525_v55 = vpop.xlane.xlu2 %524  ;;  %v541_v4 = vpop.xlane.xlu0 %540 }
 0x15f   : > { %v531_v56 = vmul.f32 0.00390625, %v525_v55  ;;  %v547_v6 = vmul.f32 0.00390625, %v541_v4 }
 0x160   : > { %v528_v58 = vpop.xlane.xlu1 %527 }
 0x161   : > { %v606_v59 = vperm.slane %v531_v56, %v568_v52  ;;  %v532_v60 = vmul.f32 0.00390625, %v528_v58  ;;  %v569_v17 = vperm.slane %v547_v6, %v568_v52 }
 0x163   : > { %v608_v62 = vperm.slane %v532_v60, %v572_v57  ;;  %v607_v63 = vsel %vm570_vm9, %v606_v59, %v605_v61 }
 0x165   : > { %v609_v0 = vsel %vm574_vm10, %v608_v62, %v607_v63 }
 0x166   : > { %v538_v1 = vpop.xlane.xlu2 %537  ;;  %922 = vmatmul.msk.f32.vlgmr.msra.gmra.mxu1 %vm576_vm11, %v609_v0 }
 0x167   : > { %v546_v2 = vmul.f32 0.00390625, %v538_v1 }
 0x169   : > { %v565_v5 = vperm.slane %v546_v2, %v564_v49 }
 0x16b   : > { %v567_v16 = vsel %vm566_vm8, %v565_v5, %v563_v7 }
 0x16c   : > { %v571_v27 = vsel %vm570_vm9, %v569_v17, %v567_v16 }
 0x16e   : > { %v544_v14 = vpop.xlane.xlu2 %543 }
 0x16f   : > { %v548_v15 = vmul.f32 0.00390625, %v544_v14 }
 0x171   : > { %v573_v26 = vperm.slane %v548_v15, %v572_v57  ;;  %v751_v15 = vadd.s32 24, %v732_v21 }
 0x173   : > { %v575_v8 = vsel %vm574_vm10, %v573_v26, %v571_v27 }
 0x174   : > { %921 = vmatmul.msk.f32.vlgmr.msra.gmra.mxu0 %vm576_vm11, %v575_v8 }
 0x1e3   : > { %v629_v12 = vpop.f32.mrf.mxu1 }
 0x1f1   : > { %v596_v36 = vpop.f32.mrf.mxu0 }
 0x1f2   : > { %v630_v11 = vadd.f32 %v629_v12, %v596_v36 }
 0x1f4   : > { %v633_v39 = vadd.f32 %v632_v10, %v630_v11 }
 0x1f6   : > { %v634_v20 = vmax.f32 %v633_v39, 0.0 }
 0x1f8   : > { %924 = vmatmul.msk.f32.vlgmr.msra.gmra.mxu2 %vm637_vm13, %v634_v20  ;;  %927 = vmatmul.msk.f32.vlgmr.msra.gmra.mxu3 %vm637_vm13, %v634_v20 }
 0x27b   : > { %v662_v45 = vpop.f32.mrf.mxu2  ;;  %v707_v46 = vpop.f32.mrf.mxu3 }
 0x27c   : > { %v663_v47 = vadd.f32 %v662_v45, %v636_v42  ;;  %v708_v48 = vadd.f32 %v707_v46, %v686_v44 }
 0x27e   : > { %v925_v43 = vmul.f32 -1.442695, %v663_v47  ;;  %v928_v49 = vmul.f32 -1.442695, %v708_v48 }
 0x280   : > { %1006 = vpow2.f32 %v925_v43 }
 0x281   : > { %1008 = vpow2.f32 %v928_v49 }
 0x286   : > { %v1007_v50 = vpop.eup %1006 }
 0x287   : > { %v1009_v51 = vpop.eup %1008  ;;  %v668_v52 = vadd.f32 1.0, %v1007_v50 }
 0x288   : > { %v713_v53 = vadd.f32 1.0, %v1009_v51 }
 0x289   : > { %1010 = vrcp.f32 %v668_v52  ;;  %v680_v59 = vand.u32 2147483648, %v668_v52  ;;  %v678_v61 = vand.u32 2147483647, %v668_v52  ;;  %vm674_vm15 = vweird.f32 %v668_v52 }
 0x28a   : > { %1012 = vrcp.f32 %v713_v53  ;;  %v725_v7 = vand.u32 2147483648, %v713_v53  ;;  %vm719_vm3 = vweird.f32 %v713_v53  ;;  %v723_v14 = vand.u32 2147483647, %v713_v53 }
 0x28b   : > { %v681_v0 = vor.u32 1.1754944e-38, %v680_v59  ;;  %vm679_vm1 = vcmp.eq.f32.partialorder %v678_v61, 8.507059e+37 }
 0x28c   : > { %v726_v17 = vor.u32 1.1754944e-38, %v725_v7  ;;  %vm724_vm5 = vcmp.eq.f32.partialorder %v723_v14, 8.507059e+37 }
 0x28f   : > { %v1011_v54 = vpop.eup %1010 }
 0x290   : > { %v1013_v55 = vpop.eup %1012  ;;  %v670_v56 = vmul.f32 %v1011_v54, %v668_v52  ;;  %vm675_vm14 = vweird.f32 %v1011_v54 }
 0x291   : > { %v715_v58 = vmul.f32 %v1013_v55, %v713_v53  ;;  %vm676_vm0 = vmor %vm674_vm15, %vm675_vm14  ;;  %vm720_vm2 = vweird.f32 %v1013_v55 }
 0x292   : > { %v671_v57 = vsub.f32 1.0, %v670_v56  ;;  %vm721_vm4 = vmor %vm719_vm3, %vm720_vm2 }
 0x293   : > { %v716_v62 = vsub.f32 1.0, %v715_v58 }
 0x294   : > { %v672_v60 = vmul.f32 %v1011_v54, %v671_v57 }
 0x295   : > { %v717_v4 = vmul.f32 %v1013_v55, %v716_v62 }
 0x296   : > { %v673_v63 = vadd.f32 %v1011_v54, %v672_v60 }
 0x297   : > { %v718_v6 = vadd.f32 %v1013_v55, %v717_v4 }
 0x298   : > { %v677_v1 = vsel %vm676_vm0, %v1011_v54, %v673_v63 }
 0x299   : > { %v682_v2 = vsel %vm679_vm1, %v681_v0, %v677_v1  ;;  %v722_v16 = vsel %vm721_vm4, %v1013_v55, %v718_v6 }
 0x29a   : > { %v684_v3 = vadd.f32 1.0, %v682_v2  ;;  %v727_v26 = vsel %vm724_vm5, %v726_v17, %v722_v16 }
 0x29b   : > { %v729_v27 = vadd.f32 1.0, %v727_v26 }
 0x29c   : > { %v730_v5 = vperm.slane %v684_v3, 0 }
 0x29d   : > { %v771_v8 = vperm.slane %v729_v27, 0 }
 0x29e   : > { %747 = vperm.xlu2 %992, %v730_v5   ;;  %741 = vperm.xlu1 %991, %v730_v5  }
 0x29f   : > { %735 = vperm.xlu0 %990, %v730_v5  }
 0x2a6   : > { %994 = vset.pattern.permute.xlu2 %v732_v21  ;;  %993 = vset.pattern.permute.xlu1 %v751_v15 }
 0x2a7   : > { %997 = vset.pattern.permute.xlu0 %v751_v15 }
 0x2ae   : > { %776 = vperm.xlu2 %994, %v771_v8   ;;  %753 = vperm.xlu1 %993, %v730_v5  }
 0x2af   : > { %794 = vperm.xlu0 %997, %v771_v8  }
 0x2b6   : > { %996 = vset.pattern.permute.xlu2 %v745_v41  ;;  %995 = vset.pattern.permute.xlu1 %v1430_v40 }
 0x2be   : > { %788 = vperm.xlu2 %996, %v771_v8   ;;  %782 = vperm.xlu1 %995, %v771_v8  }
 0x2f8   : > { %v748_v33 = vpop.permute.xlu2 %747 }
 0x2f9   : > { %v759_v34 = vmul.f32 %v748_v33, %v1334_v25  ;;  %v760_v12 = vmul.f32 %v748_v33, %v1345_v29 }
 0x2fb   : > { %767 = vst [vmem:[%s1443_s19 + $0x20] sm:$0xff] %v759_v34 }
 0x2fc   : > { %768 = vst [vmem:[%s1443_s19 + $0x28] sm:$0xff] %v760_v12 }
 0x308   : > { %v777_v36 = vpop.permute.xlu2 %776 }
 0x309   : > { %v796_v10 = vmul.f32 %v777_v36, %v1331_v24  ;;  %v797_v11 = vmul.f32 %v777_v36, %v1342_v28 }
 0x30b   : > { %804 = vst [vmem:[%s1443_s19 + $0x40] sm:$0xff] %v796_v10 }
 0x30c   : > { %805 = vst [vmem:[%s1443_s19 + $0x48] sm:$0xff] %v797_v11 }
 0x310   : > { %v742_v25 = vpop.permute.xlu1 %741 }
 0x311   : > { %v757_v29 = vmul.f32 %v742_v25, %v1318_v18  ;;  %v758_v39 = vmul.f32 %v742_v25, %v1324_v22  ;;  %v736_v20 = vpop.permute.xlu0 %735 }
 0x312   : > { %v755_v21 = vmul.f32 %v736_v20, %v1321_v19  ;;  %v756_v40 = vmul.f32 %v736_v20, %v1327_v23 }
 0x313   : > { %765 = vst [vmem:[%s1443_s19 + $0x10] sm:$0xff] %v757_v29 }
 0x314   : > { %766 = vst [vmem:[%s1443_s19 + $0x18] sm:$0xff] %v758_v39 }
 0x315   : > { %763 = vst [vmem:[%s1443_s19] sm:$0xff] %v755_v21 }
 0x316   : > { %764 = vst [vmem:[%s1443_s19 + $0x8] sm:$0xff] %v756_v40 }
 0x318   : > { %v789_v24 = vpop.permute.xlu2 %788 }
 0x319   : > { %v800_v28 = vmul.f32 %v789_v24, %v1351_v30  ;;  %v801_v18 = vmul.f32 %v789_v24, %v1355_v31 }
 0x31b   : > { %808 = vst [vmem:[%s1443_s19 + $0x60] sm:$0xff] %v800_v28 }
 0x31c   : > { %809 = vst [vmem:[%s1443_s19 + $0x68] sm:$0xff] %v801_v18 }
 0x320   : > { %v754_v19 = vpop.permute.xlu1 %753 }
 0x321   : > { %v761_v22 = vmul.f32 %v754_v19, %v1358_v9  ;;  %v762_v23 = vmul.f32 %v754_v19, %v1361_v32  ;;  %v795_v41 = vpop.permute.xlu0 %794 }
 0x322   : > { %v802_v42 = vmul.f32 %v795_v41, %v1381_v37  ;;  %v803_v44 = vmul.f32 %v795_v41, %v1385_v38 }
 0x323   : > { %769 = vst [vmem:[%s1443_s19 + $0x30] sm:$0xff] %v761_v22 }
 0x324   : > { %770 = vst [vmem:[%s1443_s19 + $0x38] sm:$0xff] %v762_v23 }
 0x325   : > { %810 = vst [vmem:[%s1443_s19 + $0x70] sm:$0xff] %v802_v42 }
 0x326   : > { %811 = vst [vmem:[%s1443_s19 + $0x78] sm:$0xff] %v803_v44 }
 0x330   : > { %v783_v30 = vpop.permute.xlu1 %782 }
 0x331   : > { %v798_v31 = vmul.f32 %v783_v30, %v1371_v13  ;;  %v799_v9 = vmul.f32 %v783_v30, %v1375_v35 }
 0x333   : > { %806 = vst [vmem:[%s1443_s19 + $0x50] sm:$0xff] %v798_v31 }
 0x334   : > { %807 = vst [vmem:[%s1443_s19 + $0x58] sm:$0xff] %v799_v9 }
 0x335   : > { %1071 = shalt.err (!%p1068_p7)
}
 0x336   : > { %s1115_s18 = smov 256   ;;  %s1116_s19 = smov 16  }
 0x337   : > { %938 = dma.vmem_to_hbm [thread:$0]  (%p1222_p11), %s826_s20, 2048, %s828_s21, %s813_s29, %s1115_s18, %s1115_s18, %s1116_s19  }
 0x338 PF: > { %s842_s28 = sand.u32 1, %s1098_s13   ;;  %p1534_p5 = scmp.ge.s32.totalorder %s1110_s16, 2 }
 0x339   : > { %s843_s15 = scalar_lea.sflag [#allocation4], %s842_s28 }
 0x33a   : > { %p945_p8 = pnand %p1534_p5, %p1226_p12 }
 0x33c   : > { %p946_p10 = pneg %p945_p8 }
 0x33e   : > { %1093 = dma.done.wait (%p946_p10), %s843_s15, 2048  }
 0x33f   : > { %1095 = vsyncadd (%p946_p10), %s843_s15, 4294965248  ;;  %s1535_s16 = sld [smem:[#allocation9_spill]]  ;;  %s1538_s13 = smov %s1102_s14 }
 0x340   : > { %s1536_s22 = sld [smem:[#allocation8_spill]] }
 0x341   : > { %s1537_s15 = sld [smem:[#allocation10_spill]] }
 0x345   : > { %p23_p2 = scmp.ge.s32.totalorder %s1535_s16, 4  }
 0x346   : > { %s1539_s14 = smov %s1536_s22 }
 0x347   :  { %25 = sbr.rel (!%p23_p2) target bundleno = 5 (0x5), region = 108 }
 0x34c   :  { %849 = vsyncpa [#allocation3], 1 }
 0x34d   :  { %851 = vsyncpa [#allocation3 + $0x1], 1 }
 0x34e   :  { %852 = vsyncpa [#allocation4], 1 }
 0x34f   :  { %854 = vsyncpa [#allocation4 + $0x1], 1 }

</bundles_post_ra>
